<compile_context>
chip_gen: v7x
topology: tpu7x:2x2x1
jax: 0.10.0
libtpu: 0.0.40
codegen_flags: <defaults>
</compile_context>

<pallas_src>
import functools

import jax
import jax.numpy as jnp
from jax.experimental import pallas as pl
from jax.experimental.pallas import tpu as pltpu

TC = 128                                    # lane width
ACC_ROW_CANDS = (256, 128, 64, 32, 16, 8)   # widest accumulator that divides tr


def _is_v7x() -> bool:
    """Best-effort chip-generation probe (v7x: 2 TensorCores, 3.2 TB/s HBM)."""
    try:
        dev = jax.devices()[0]
        kind = (getattr(dev, "device_kind", "") or "").lower()
        return dev.platform == "tpu" and "v7" in kind
    except Exception:
        return False


def _sqdiff_partial_kernel(pred_ref, tgt_ref, out_ref, *, rows, tr, spc,
                           grid_steps, acc_rows, boundary_overhangs,
                           has_redundant):
    """out[c] accumulates an (acc_rows, 128) f32 slab of partial sums of
    (pred - tgt)**2 over the blocks owned by "core" c."""
    c = pl.program_id(0)
    i = pl.program_id(1)
    step = c * spc + i

    @pl.when(i == 0)
    def _init():
        out_ref[...] = jnp.zeros_like(out_ref)

    def _accumulate(sq):
        # (tr,128) -> (tr//acc_rows, acc_rows, 128) is a pure vreg regrouping;
        # the sum over axis 0 is acc_rows/8 independent short vreg-add chains
        # (VPU only, no XLU), accumulated into the resident output block.
        out_ref[...] += sq.reshape(tr // acc_rows, acc_rows, TC).sum(axis=0)[None]

    def _body():
        d = pred_ref[...].astype(jnp.float32) - tgt_ref[...].astype(jnp.float32)
        sq = d * d
        if boundary_overhangs:
            last = grid_steps - 1

            @pl.when(step == last)
            def _masked():
                # Only the boundary block pays iota+cmp+select; static offset.
                row_ids = (jax.lax.broadcasted_iota(jnp.int32, (tr, TC), 0)
                           + last * tr)
                # Keep jnp.where (NOT multiply-by-mask): overhang rows hold
                # garbage that may square to Inf/NaN.
                _accumulate(jnp.where(row_ids < rows, sq, 0.0))

            @pl.when(step != last)
            def _unmasked():
                _accumulate(sq)
        else:
            _accumulate(sq)

    if has_redundant:
        # Redundant clamped steps (uneven core split) skip all compute.
        pl.when(step < grid_steps)(_body)
    else:
        _body()


def _mse_loss_pallas(pred, tgt, *, min_pallas_elems=0, num_cores=None):
    assert pred.shape == tgt.shape, (pred.shape, tgt.shape)
    n_elems = pred.size
    if n_elems == 0:
        return jnp.float32(0.0)
    if n_elems < min_pallas_elems:
        # Tiny inputs: pallas_call launch overhead dwarfs the work.
        d = pred.astype(jnp.float32) - tgt.astype(jnp.float32)
        return jnp.mean(d * d)

    p = pred.reshape(-1)
    t = tgt.reshape(-1)

    # Rare ragged case: sum the < 128-element flat tail in plain JAX.
    main = (n_elems // TC) * TC
    tail_sum = jnp.float32(0.0)
    if main < n_elems:
        dt = p[main:].astype(jnp.float32) - t[main:].astype(jnp.float32)
        tail_sum = jnp.sum(dt * dt)
        if main == 0:
            return tail_sum / jnp.float32(n_elems)
        p, t = p[:main], t[:main]

    rows = main // TC
    p2 = p.reshape(rows, TC)   # contiguous reshape: no pad, no copy, no astype
    t2 = t.reshape(rows, TC)

    is_v7 = _is_v7x()
    itemsize = max(p2.dtype.itemsize, t2.dtype.itemsize)
    # dtype-aware block bytes: ~1 MiB/input block on v5e/v6e, ~4 MiB on v7x.
    block_bytes = (4 << 20) if is_v7 else (1 << 20)
    tr_max = max(8, block_bytes // (TC * itemsize))
    tr = min(tr_max, ((rows + 7) // 8) * 8)          # sublane-aligned rows/block

    # Widest resident accumulator that divides tr (short independent chains).
    acc_rows = next(a for a in ACC_ROW_CANDS if tr % a == 0)

    grid_steps = -(-rows // tr)                      # blocks covering the slab
    nc_req = num_cores if num_cores is not None else (2 if is_v7 else 1)
    nc = max(1, min(nc_req, grid_steps))
    spc = -(-grid_steps // nc)                       # steps per "core" slice
    boundary_overhangs = (rows % tr) != 0            # last block overhangs slab
    has_redundant = (nc * spc) != grid_steps         # clamped no-op steps exist
    last_block = grid_steps - 1

    if has_redundant:
        def in_map(c, i):
            # Clamp so no block origin is out of bounds; clamped steps are
            # fully skipped inside the kernel (one wasted refetch at most).
            return (jnp.minimum(c * spc + i, last_block), 0)
    else:
        def in_map(c, i):
            return (c * spc + i, 0)

    cp_kwargs = dict(dimension_semantics=("parallel", "arbitrary"))
    if is_v7:
        # 2 inputs x 2 buffers x 4 MiB blocks = 16 MiB live; give headroom
        # under v7x's 64 MiB physical VMEM.
        cp_kwargs["vmem_limit_bytes"] = 40 << 20
    # TODO(synk): on v7x, verify in xprof that the leading "parallel" axis
    # really shards across both TensorCores; if one TC is idle, switch to
    # pltpu.CORE_PARALLEL / pl.core_map over create_tensorcore_mesh.

    cost = pl.CostEstimate(
        flops=3 * rows * TC,
        transcendentals=0,
        bytes_accessed=rows * TC * (p2.dtype.itemsize + t2.dtype.itemsize)
        + nc * acc_rows * TC * 4,
    )

    partials = pl.pallas_call(
        functools.partial(_sqdiff_partial_kernel, rows=rows, tr=tr, spc=spc,
                          grid_steps=grid_steps, acc_rows=acc_rows,
                          boundary_overhangs=boundary_overhangs,
                          has_redundant=has_redundant),
        out_shape=jax.ShapeDtypeStruct((nc, acc_rows, TC), jnp.float32),
        grid=(nc, spc),
        in_specs=[pl.BlockSpec((tr, TC), in_map),
                  pl.BlockSpec((tr, TC), in_map)],
        out_specs=pl.BlockSpec((1, acc_rows, TC), lambda c, i: (c, 0, 0)),
        compiler_params=pltpu.CompilerParams(**cp_kwargs),
        cost_estimate=cost,
    )(p2, t2)

    # One final cross-lane reduce + divide, outside the hot loop.
    return (jnp.sum(partials) + tail_sum) / jnp.float32(n_elems)


class KeypointHeatmapLoss:
    """JAX/Pallas port of top.model.loss.KeypointHeatmapLoss."""

    def __init__(self, min_pallas_elems: int = 0, num_cores=None):
        # TODO(synk): reference __init__/forward bodies are NotImplemented;
        # semantics fixed here as mean-squared-error over the "heatmap" entry.
        # In production set min_pallas_elems ~ 1<<20 so tiny heatmaps route to
        # plain XLA (pallas_call launch overhead dominates there).
        self.min_pallas_elems = min_pallas_elems
        self.num_cores = num_cores   # None -> auto (2 on v7x, else 1)

    def __call__(self, output: dict, target: dict):
        return _mse_loss_pallas(output["heatmap"], target["heatmap"],
                                min_pallas_elems=self.min_pallas_elems,
                                num_cores=self.num_cores)


if __name__ == "__main__":
    key = jax.random.PRNGKey(0)

    def check(k, shape, dtype, num_cores=None):
        k1, k2 = jax.random.split(k)
        pred = jax.random.uniform(k1, shape, dtype=jnp.float32).astype(dtype)
        tgt = jax.random.uniform(k2, shape, dtype=jnp.float32).astype(dtype)
        loss_fn = KeypointHeatmapLoss(num_cores=num_cores)  # threshold 0 -> Pallas
        loss = loss_fn({"heatmap": pred}, {"heatmap": tgt})
        loss = jax.block_until_ready(loss)
        ref = jnp.mean((pred.astype(jnp.float32) - tgt.astype(jnp.float32)) ** 2)
        assert jnp.allclose(loss, ref, rtol=1e-4, atol=1e-6), (shape, dtype, loss, ref)
        return loss

    keys = jax.random.split(key, 5)
    check(keys[0], (2, 4, 16, 16), jnp.float32)       # small NCHW, single block
    check(keys[1], (3, 8, 96, 128), jnp.float32)      # multi-step + boundary mask
    check(keys[2], (4, 8, 128, 128), jnp.bfloat16)    # bf16 stream, 1 MiB block
    check(keys[3], (2, 3, 17, 19), jnp.float32)       # ragged (<128-elem tail) path
    check(keys[4], (6, 8, 96, 128), jnp.float32,      # forced uneven 2-core split:
          num_cores=2)                                # redundant step + boundary mask

    print("KERNEL_OK")
</pallas_src>

<mosaic_0001>
module attributes {stable_mosaic.version = 11 : i64} {
  func.func @_sqdiff_partial_kernel(%arg0: i32, %arg1: i32, %arg2: memref<16x128xf32, #tpu.memory_space<vmem>>, %arg3: memref<16x128xf32, #tpu.memory_space<vmem>>, %arg4: memref<1x16x128xf32, #tpu.memory_space<vmem>>) attributes {dimension_semantics = [#tpu.dimension_semantics<parallel>, #tpu.dimension_semantics<arbitrary>], iteration_bounds = array<i64: 1, 1>, scalar_prefetch = 0 : i64, scratch_operands = 0 : i64, tpu.core_type = #tpu.core_type<tc>, window_params = [{transform_indices = @transform_0, window_bounds = array<i64: 16, 128>}, {transform_indices = @transform_1, window_bounds = array<i64: 16, 128>}, {transform_indices = @transform_2, window_bounds = array<i64: 1, 16, 128>}]} {
    %c0_i32 = arith.constant 0 : i32
    %0 = arith.cmpi eq, %arg1, %c0_i32 : i32
    %1 = arith.extui %0 : i1 to i32
    %c0_i32_0 = arith.constant 0 : i32
    %2 = arith.cmpi ne, %1, %c0_i32_0 : i32
    scf.if %2 {
      %cst_10 = arith.constant 0.000000e+00 : f32
      %13 = vector.broadcast %cst_10 : f32 to vector<1x16x128xf32>
      %c0_11 = arith.constant 0 : index
      %c0_12 = arith.constant 0 : index
      %c0_13 = arith.constant 0 : index
      %14 = vector.load %arg4[%c0_11, %c0_12, %c0_13] : memref<1x16x128xf32, #tpu.memory_space<vmem>>, vector<1x16x128xf32>
      tpu.vector_store %arg4[%c0_11, %c0_12, %c0_13], %13 {strides = array<i32>} : memref<1x16x128xf32, #tpu.memory_space<vmem>>, vector<1x16x128xf32>,
    } else {
    }
    %c0 = arith.constant 0 : index
    %c0_1 = arith.constant 0 : index
    %3 = vector.load %arg2[%c0, %c0_1] : memref<16x128xf32, #tpu.memory_space<vmem>>, vector<16x128xf32>
    %c0_2 = arith.constant 0 : index
    %c0_3 = arith.constant 0 : index
    %4 = vector.load %arg3[%c0_2, %c0_3] : memref<16x128xf32, #tpu.memory_space<vmem>>, vector<16x128xf32>
    %5 = arith.subf %3, %4 : vector<16x128xf32>
    %6 = arith.mulf %5, %5 : vector<16x128xf32>
    %c0_4 = arith.constant 0 : index
    %c0_5 = arith.constant 0 : index
    %c0_6 = arith.constant 0 : index
    %7 = vector.load %arg4[%c0_4, %c0_5, %c0_6] : memref<1x16x128xf32, #tpu.memory_space<vmem>>, vector<1x16x128xf32>
    %8 = vector.shape_cast %6 : vector<16x128xf32> to vector<1x16x128xf32>
    %cst = arith.constant dense<0.000000e+00> : vector<16x128xf32>
    %9 = vector.multi_reduction <add>, %8, %cst [0] : vector<1x16x128xf32> to vector<16x128xf32>
    %10 = vector.shape_cast %9 : vector<16x128xf32> to vector<1x16x128xf32>
    %11 = arith.addf %7, %10 : vector<1x16x128xf32>
    %c0_7 = arith.constant 0 : index
    %c0_8 = arith.constant 0 : index
    %c0_9 = arith.constant 0 : index
    %12 = vector.load %arg4[%c0_7, %c0_8, %c0_9] : memref<1x16x128xf32, #tpu.memory_space<vmem>>, vector<1x16x128xf32>
    tpu.vector_store %arg4[%c0_7, %c0_8, %c0_9], %11 {strides = array<i32>} : memref<1x16x128xf32, #tpu.memory_space<vmem>>, vector<1x16x128xf32>,
    return
  }
  func.func @transform_0(%arg0: i32, %arg1: i32) -> (i32, i32) {
    %c1_i32 = arith.constant 1 : i32
    %0 = arith.muli %arg0, %c1_i32 : i32
    %1 = arith.addi %0, %arg1 : i32
    %c0_i32 = arith.constant 0 : i32
    %c0_i32_0 = arith.constant 0 : i32
    return %1, %c0_i32 : i32, i32
  }
  func.func @transform_1(%arg0: i32, %arg1: i32) -> (i32, i32) {
    %c1_i32 = arith.constant 1 : i32
    %0 = arith.muli %arg0, %c1_i32 : i32
    %1 = arith.addi %0, %arg1 : i32
    %c0_i32 = arith.constant 0 : i32
    %c0_i32_0 = arith.constant 0 : i32
    return %1, %c0_i32 : i32, i32
  }
  func.func @transform_2(%arg0: i32, %arg1: i32) -> (i32, i32, i32) {
    %c0_i32 = arith.constant 0 : i32
    %c0_i32_0 = arith.constant 0 : i32
    %c0_i32_1 = arith.constant 0 : i32
    return %arg0, %c0_i32, %c0_i32_0 : i32, i32, i32
  }
}

</mosaic_0001>

<bundles_post_ra>
// kernel: tpu_custom_call.1
= control target key start
LH: loop header
LB: loop body
LE: loop exit
PB: predicated region body
PF: predicated region fallthrough
CT: control target
= control target key end

     0   :  { %7 = vsyncpa [#allocation3], 0  ;;  %s235_s0 = inlined_call_operand.hbm [shape: f32[16,128], index: 0, kind: input, shape index: {}]   ;;  %s236_s1 = inlined_call_operand.hbm [shape: f32[16,128], index: 1, kind: input, shape index: {}]   ;;  %s237_s2 = inlined_call_operand.hbm [shape: f32[1,16,128], index: 2, kind: output, shape index: {}]  }
   0x1   :  { %8 = vsyncpa [#allocation6], 0 }
   0x2   :  { %9 = vsyncpa [#allocation4], 0  ;;  %s170_s9 = smov [#allocation2]   ;;  %s98_s13 = scalar_lea.hbm %s235_s0, 256 }
   0x3   :  { %s19_s10 = sshll.u32 %s170_s9, 4  ;;  %p99_p0 = scmp.ne.s32.totalorder %s235_s0, %s98_s13  ;;  %s20_s10 = int_to_ptr.vmem [resolvable:$true] %s19_s10 }
   0x4   :  { %p102_p1 = scmp.lt.u32.totalorder %s98_s13, %s235_s0 }
   0x6   :  { %p104_p2 = pnand %p102_p1, %p99_p0 }
   0x8   :  { %107 = shalt.err (!%p104_p2)
}
   0x9   :  { %s108_s18 = scalar_lea.vmem %s20_s10, 256  ;;  %p113_p4 = scmp.lt.s32.totalorder %s20_s10, %s20_s10 }
   0xa   :  { %p109_p3 = scmp.ne.s32.totalorder %s20_s10, %s108_s18  ;;  %p114_p5 = scmp.lt.s32.totalorder %s108_s18, %s108_s18 }
   0xc   :  { %p115_p6 = por %p114_p5, %p113_p4 }
   0xe   :  { %p116_p7 = pnand %p115_p6, %p109_p3 }
  0x10   :  { %119 = shalt.err (!%p116_p7)
}
  0x11   :  { %s171_s19 = smov 128   ;;  %s172_s20 = smov 8  }
  0x12   :  { %25 = dma.hbm_to_vmem [thread:$0]  %s235_s0, 256, %s20_s10, [#allocation3], %s171_s19, %s171_s19, %s172_s20  }
  0x13   :  { %s173_s23 = smov [#allocation5]   ;;  %s120_s27 = scalar_lea.hbm %s236_s1, 256 }
  0x14   :  { %s35_s24 = sshll.u32 %s173_s23, 4  ;;  %p121_p8 = scmp.ne.s32.totalorder %s236_s1, %s120_s27  ;;  %s36_s24 = int_to_ptr.vmem [resolvable:$true] %s35_s24 }
  0x15   :  { %p124_p9 = scmp.lt.u32.totalorder %s120_s27, %s236_s1 }
  0x17   :  { %p126_p10 = pnand %p124_p9, %p121_p8 }
  0x19   :  { %129 = shalt.err (!%p126_p10)
}
  0x1a   :  { %s130_s4 = scalar_lea.vmem %s36_s24, 256  ;;  %p135_p12 = scmp.lt.s32.totalorder %s36_s24, %s36_s24 }
  0x1b   :  { %p131_p11 = scmp.ne.s32.totalorder %s36_s24, %s130_s4  ;;  %p136_p13 = scmp.lt.s32.totalorder %s130_s4, %s130_s4 }
  0x1d   :  { %p137_p0 = por %p136_p13, %p135_p12 }
  0x1f   :  { %p138_p1 = pnand %p137_p0, %p131_p11 }
  0x21   :  { %141 = shalt.err (!%p138_p1)
}
  0x22   :  { %41 = dma.hbm_to_vmem [thread:$0]  %s236_s1, 256, %s36_s24, [#allocation6], %s171_s19, %s171_s19, %s172_s20  }
  0x23   :  { %164 = dma.done.wait [#allocation3], 256  }
  0x24   :  { %165 = vsyncadd [#allocation3], 4294967040 }
  0x25   :  { %166 = dma.done.wait [#allocation6], 256  }
  0x26   :  { %167 = vsyncadd [#allocation6], 4294967040  ;;  %v58_v0 = vld [vmem:[#allocation2] sm:$0xff]  ;;  %v60_v1 = vld [vmem:[#allocation5] sm:$0xff]  ;;  %s174_s6 = smov [#allocation7]  }
  0x27   :  { %v59_v2 = vld [vmem:[#allocation2 + $0x8] sm:$0xff]  ;;  %v62_v3 = vsub.f32 %v58_v0, %v60_v1  ;;  %v61_v4 = vld [vmem:[#allocation5 + $0x8] sm:$0xff]  ;;  %s79_s7 = sshll.u32 %s174_s6, 4  ;;  %s80_s7 = int_to_ptr.vmem [resolvable:$true] %s79_s7 }
  0x28   :  { %v63_v5 = vsub.f32 %v59_v2, %v61_v4  ;;  %s142_s8 = scalar_lea.vmem %s80_s7, 256  ;;  %p147_p3 = scmp.lt.s32.totalorder %s80_s7, %s80_s7 }
  0x29   :  { %v64_v6 = vmul.f32 %v62_v3, %v62_v3  ;;  %p143_p2 = scmp.ne.s32.totalorder %s80_s7, %s142_s8  ;;  %p148_p4 = scmp.lt.s32.totalorder %s142_s8, %s142_s8 }
  0x2a   :  { %v65_v7 = vmul.f32 %v63_v5, %v63_v5 }
  0x2b   :  { %72 = vst [vmem:[#allocation7] sm:$0xff] %v64_v6  ;;  %p149_p5 = por %p148_p4, %p147_p3 }
  0x2c   :  { %73 = vst [vmem:[#allocation7 + $0x8] sm:$0xff] %v65_v7 }
  0x2d   :  { %p150_p6 = pnand %p149_p5, %p143_p2 }
  0x2f   :  { %153 = shalt.err (!%p150_p6)
}
  0x30   :  { %s154_s10 = scalar_lea.hbm %s237_s2, 256 }
  0x31   :  { %p155_p7 = scmp.ne.s32.totalorder %s237_s2, %s154_s10  ;;  %p158_p8 = scmp.lt.u32.totalorder %s154_s10, %s237_s2 }
  0x33   :  { %p160_p9 = pnand %p158_p8, %p155_p7 }
  0x35   :  { %163 = shalt.err (!%p160_p9)
}
  0x36   :  { %85 = dma.vmem_to_hbm [thread:$0]  %s80_s7, 256, %s237_s2, [#allocation4], %s171_s19, %s171_s19, %s172_s20  }
  0x37   :  { %168 = dma.done.wait [#allocation4], 256  }
  0x38   :  { %169 = vsyncadd [#allocation4], 4294967040 }
  0x39   :  { %89 = vsyncpa [#allocation3], 1 }
  0x3a   :  { %90 = vsyncpa [#allocation6], 1 }
  0x3b   :  { %91 = vsyncpa [#allocation4], 1 }

</bundles_post_ra>
